<compile_context>
chip_gen: v5e
topology: v5e:2x2
jax: 0.10.0
libtpu: 0.0.40
codegen_flags: <defaults>
</compile_context>

<pallas_src>
import jax
import jax.numpy as jnp
from jax.experimental import pallas as pl
from jax.experimental.pallas import tpu as pltpu


LAYER_DIMS = ((100, 75), (75, 50), (50, 25), (25, 1))
IN_FEATURES = LAYER_DIMS[0][0]
OUT_FEATURES = LAYER_DIMS[-1][1]


def _ceil_div(a, b):
    return -(-a // b)


def _round_up(n, m):
    return _ceil_div(n, m) * m


def teacher_mlp_kernel(x_ref,
                       w1_ref, b1_ref,
                       w2_ref, b2_ref,
                       w3_ref, b3_ref,
                       w4_ref, b4_ref,
                       o_ref):
    """Fused 4-layer MLP on one batch tile.

    Layers 1-3: MXU dots (bf16 in, f32 accumulate), bias-add / ReLU in f32 on the VPU.
    Layer 4:    VPU broadcast-multiply + XLU lane-reduce (kept off the MXU), exact f32.
    """
    compute_dtype = w1_ref.dtype  # bf16 (or f32 if use_bf16=False)

    # In-kernel cast: x streams from HBM as f32; f32->bf16 convert is hidden under the MXU.
    x = x_ref[...].astype(compute_dtype)

    # Layer 1: [tb,100] @ [100,75] + [1,75] -> ReLU
    h = jnp.dot(x, w1_ref[...], preferred_element_type=jnp.float32) + b1_ref[...]
    h = jnp.maximum(h, 0.0).astype(compute_dtype)
    # Layer 2: [tb,75] @ [75,50] + [1,50] -> ReLU
    h = jnp.dot(h, w2_ref[...], preferred_element_type=jnp.float32) + b2_ref[...]
    h = jnp.maximum(h, 0.0).astype(compute_dtype)
    # Layer 3: [tb,50] @ [50,25] + [1,25] -> ReLU
    h = jnp.dot(h, w3_ref[...], preferred_element_type=jnp.float32) + b3_ref[...]
    h = jnp.maximum(h, 0.0)  # stay f32: final layer runs on the VPU/XLU

    # Layer 4: [tb,25] * [1,25] -> lane-reduce -> [tb,1]  (no activation)
    out = jnp.sum(h * w4_ref[...], axis=-1, keepdims=True) + b4_ref[...]
    o_ref[...] = out.astype(o_ref.dtype)


def _cost_estimate(batch, weight_itemsize):
    flops = 2 * batch * sum(fi * fo for fi, fo in LAYER_DIMS)
    weight_bytes = (sum(fi * fo for fi, fo in LAYER_DIMS[:3]) * weight_itemsize
                    + LAYER_DIMS[3][0] * 4                      # w4 row kept f32
                    + sum(fo for _, fo in LAYER_DIMS) * 4)      # biases f32
    bytes_accessed = (batch * IN_FEATURES * 4                   # x read as f32
                      + weight_bytes
                      + batch * OUT_FEATURES * 4)               # f32 output
    return pl.CostEstimate(flops=flops, transcendentals=0, bytes_accessed=bytes_accessed)


def _pack_operands(x, params, use_bf16):
    """Operand order must match teacher_mlp_kernel's signature."""
    compute_dtype = jnp.bfloat16 if use_bf16 else jnp.float32
    ops = [x.astype(jnp.float32)]                       # f32; cast happens inside the kernel
    for idx in range(1, 4):                             # layers 1-3: bf16 weights, f32 biases
        ops.append(params[f"w{idx}"].astype(compute_dtype))
        ops.append(params[f"b{idx}"].astype(jnp.float32))
    ops.append(params["w4"].reshape(1, LAYER_DIMS[3][0]).astype(jnp.float32))  # [1,25] row, f32
    ops.append(params["b4"].reshape(1, 1).astype(jnp.float32))                 # [1,1],  f32
    return ops, compute_dtype


def teacher_forward(x, params, *, tile_b=2048, use_bf16=True, small_batch_rows=2048):
    """Teacher forward pass.  x: [B, 100] f32 -> [B, 1] f32."""
    if x.ndim != 2 or x.shape[1] != IN_FEATURES:
        raise ValueError(f"expected x of shape [B, {IN_FEATURES}], got {x.shape}")
    batch = x.shape[0]

    operands, compute_dtype = _pack_operands(x, params, use_bf16)
    cost = _cost_estimate(batch, jnp.dtype(compute_dtype).itemsize)
    out_shape = jax.ShapeDtypeStruct((batch, OUT_FEATURES), jnp.float32)

    # ---- small/mid-batch path: single un-gridded shot, everything resident in VMEM ----
    if batch <= small_batch_rows:
        vmem = pl.BlockSpec(memory_space=pltpu.MemorySpace.VMEM)
        return pl.pallas_call(
            teacher_mlp_kernel,
            out_shape=out_shape,
            in_specs=[vmem] * len(operands),
            out_specs=vmem,
            cost_estimate=cost,
        )(*operands)

    # ---- tiled path: 1-D grid over the batch, weights resident across steps -----------
    num_tiles = _ceil_div(batch, tile_b)
    if num_tiles > 1 and num_tiles % 2 == 1:
        num_tiles += 1                                   # even tile count: balances the 2 TCs on v7x
    tile_eff = _round_up(_ceil_div(batch, num_tiles), 8)  # (8, ...) sublane alignment
    num_tiles = _ceil_div(batch, tile_eff)               # re-derive after rounding
    # Ragged final block (num_tiles*tile_eff may exceed batch): Pallas masks OOB output
    # rows and pads OOB input rows -> no wrapper-side jnp.pad / tail slicing needed.

    x_spec = pl.BlockSpec((tile_eff, IN_FEATURES), lambda i: (i, 0))
    const_specs = []
    for idx in range(3):                                  # layers 1-3: weight + bias, VMEM-resident
        fi, fo = LAYER_DIMS[idx]
        const_specs.append(pl.BlockSpec((fi, fo), lambda i: (0, 0)))
        const_specs.append(pl.BlockSpec((1, fo), lambda i: (0, 0)))
    const_specs.append(pl.BlockSpec((1, LAYER_DIMS[3][0]), lambda i: (0, 0)))   # w4 row
    const_specs.append(pl.BlockSpec((1, 1), lambda i: (0, 0)))                  # b4
    out_spec = pl.BlockSpec((tile_eff, OUT_FEATURES), lambda i: (i, 0))

    grid_spec = pltpu.PrefetchScalarGridSpec(
        num_scalar_prefetch=0,
        grid=(num_tiles,),
        in_specs=[x_spec] + const_specs,
        out_specs=out_spec,
    )

    return pl.pallas_call(
        teacher_mlp_kernel,
        out_shape=out_shape,
        grid_spec=grid_spec,
        compiler_params=pltpu.CompilerParams(
            dimension_semantics=("parallel",),   # shard batch tiles across TCs (v7x)
            vmem_limit_bytes=32 * 1024 * 1024,   # safe on v5e/v6e/v7x for tile_b <= ~8192
        ),
        cost_estimate=cost,
    )(*operands)


def init_params(key, mu=0.0, sigma=1.0):
    """Deterministic normal(mu, sigma) init, mirroring Teacher.init_weights."""
    params = {}
    for idx, (fan_in, fan_out) in enumerate(LAYER_DIMS, start=1):
        key, kw, kb = jax.random.split(key, 3)
        params[f"w{idx}"] = mu + sigma * jax.random.normal(kw, (fan_in, fan_out), jnp.float32)
        params[f"b{idx}"] = mu + sigma * jax.random.normal(kb, (1, fan_out), jnp.float32)
    return params


def teacher_ref(x, p, use_bf16=True):
    """Pure-JAX reference matching the kernel's rounding points exactly
    (bf16 MXU layers 1-3 with f32 accumulation, f32 VPU final layer)."""
    cdt = jnp.bfloat16 if use_bf16 else jnp.float32

    def mm(a, w):
        return jnp.dot(a.astype(cdt), w.astype(cdt), preferred_element_type=jnp.float32)

    h = jnp.maximum(mm(x, p["w1"]) + p["b1"], 0.0)
    h = jnp.maximum(mm(h, p["w2"]) + p["b2"], 0.0)
    h = jnp.maximum(mm(h, p["w3"]) + p["b3"], 0.0)
    return (jnp.sum(h * p["w4"].reshape(1, LAYER_DIMS[3][0]), axis=-1, keepdims=True)
            + p["b4"].reshape(1, 1))


if __name__ == "__main__":
    key = jax.random.PRNGKey(0)
    kx_small, kx_big, kp = jax.random.split(key, 3)
    params = init_params(kp)

    # 1) Small batch -> single-shot (no-grid), fully VMEM-resident path.
    b_small = 8
    x_small = jax.random.normal(kx_small, (b_small, IN_FEATURES), jnp.float32)
    out_small = jax.block_until_ready(teacher_forward(x_small, params))
    ref_small = teacher_ref(x_small, params)
    assert out_small.shape == (b_small, OUT_FEATURES), out_small.shape
    assert jnp.allclose(out_small, ref_small, rtol=1e-2, atol=1e-2), "small-batch mismatch"

    # 2) Batch not a multiple of the tile -> tiled grid path (4 tiles of 256, ragged final
    #    block handled by Pallas masking, resident weights, even tile count, no pad/slice).
    b_big = 1000
    x_big = jax.random.normal(kx_big, (b_big, IN_FEATURES), jnp.float32)
    out_big = jax.block_until_ready(
        teacher_forward(x_big, params, tile_b=256, small_batch_rows=0))
    ref_big = teacher_ref(x_big, params)
    assert out_big.shape == (b_big, OUT_FEATURES), out_big.shape
    assert jnp.allclose(out_big, ref_big, rtol=1e-2, atol=1e-2), "tiled-path mismatch"

    print("KERNEL_OK")
</pallas_src>

<mosaic_0001>
module attributes {stable_mosaic.version = 11 : i64} {
  func.func @teacher_mlp_kernel(%arg0: memref<8x100xf32, #tpu.memory_space<vmem>>, %arg1: memref<100x75xbf16, #tpu.memory_space<vmem>>, %arg2: memref<1x75xf32, #tpu.memory_space<vmem>>, %arg3: memref<75x50xbf16, #tpu.memory_space<vmem>>, %arg4: memref<1x50xf32, #tpu.memory_space<vmem>>, %arg5: memref<50x25xbf16, #tpu.memory_space<vmem>>, %arg6: memref<1x25xf32, #tpu.memory_space<vmem>>, %arg7: memref<1x25xf32, #tpu.memory_space<vmem>>, %arg8: memref<1x1xf32, #tpu.memory_space<vmem>>, %arg9: memref<8x1xf32, #tpu.memory_space<vmem>>) attributes {dimension_semantics = [], scalar_prefetch = 0 : i64, scratch_operands = 0 : i64, tpu.core_type = #tpu.core_type<tc>} {
    %c0 = arith.constant 0 : index
    %c0_0 = arith.constant 0 : index
    %0 = vector.load %arg0[%c0, %c0_0] : memref<8x100xf32, #tpu.memory_space<vmem>>, vector<8x100xf32>
    %1 = arith.truncf %0 : vector<8x100xf32> to vector<8x100xbf16>
    %c0_1 = arith.constant 0 : index
    %c0_2 = arith.constant 0 : index
    %2 = vector.load %arg1[%c0_1, %c0_2] : memref<100x75xbf16, #tpu.memory_space<vmem>>, vector<100x75xbf16>
    %cst = arith.constant dense<0.000000e+00> : vector<8x75xf32>
    %3 = tpu.matmul %1, %2, %cst {dimension_numbers = #tpu.dot_dimension_numbers<[1], [0], [0], [1], [0, 0, 1, 1], [], []>} : vector<8x100xbf16>, vector<100x75xbf16>, vector<8x75xf32> -> vector<8x75xf32>
    %c0_3 = arith.constant 0 : index
    %c0_4 = arith.constant 0 : index
    %4 = vector.load %arg2[%c0_3, %c0_4] : memref<1x75xf32, #tpu.memory_space<vmem>>, vector<1x75xf32>
    %5 = vector.broadcast %4 : vector<1x75xf32> to vector<8x75xf32>
    %6 = arith.addf %3, %5 : vector<8x75xf32>
    %cst_5 = arith.constant 0.000000e+00 : f32
    %7 = vector.broadcast %cst_5 : f32 to vector<8x75xf32>
    %8 = arith.maximumf %6, %7 : vector<8x75xf32>
    %9 = arith.truncf %8 : vector<8x75xf32> to vector<8x75xbf16>
    %c0_6 = arith.constant 0 : index
    %c0_7 = arith.constant 0 : index
    %10 = vector.load %arg3[%c0_6, %c0_7] : memref<75x50xbf16, #tpu.memory_space<vmem>>, vector<75x50xbf16>
    %cst_8 = arith.constant dense<0.000000e+00> : vector<8x50xf32>
    %11 = tpu.matmul %9, %10, %cst_8 {dimension_numbers = #tpu.dot_dimension_numbers<[1], [0], [0], [1], [0, 0, 1, 1], [], []>} : vector<8x75xbf16>, vector<75x50xbf16>, vector<8x50xf32> -> vector<8x50xf32>
    %c0_9 = arith.constant 0 : index
    %c0_10 = arith.constant 0 : index
    %12 = vector.load %arg4[%c0_9, %c0_10] : memref<1x50xf32, #tpu.memory_space<vmem>>, vector<1x50xf32>
    %13 = vector.broadcast %12 : vector<1x50xf32> to vector<8x50xf32>
    %14 = arith.addf %11, %13 : vector<8x50xf32>
    %cst_11 = arith.constant 0.000000e+00 : f32
    %15 = vector.broadcast %cst_11 : f32 to vector<8x50xf32>
    %16 = arith.maximumf %14, %15 : vector<8x50xf32>
    %17 = arith.truncf %16 : vector<8x50xf32> to vector<8x50xbf16>
    %c0_12 = arith.constant 0 : index
    %c0_13 = arith.constant 0 : index
    %18 = vector.load %arg5[%c0_12, %c0_13] : memref<50x25xbf16, #tpu.memory_space<vmem>>, vector<50x25xbf16>
    %cst_14 = arith.constant dense<0.000000e+00> : vector<8x25xf32>
    %19 = tpu.matmul %17, %18, %cst_14 {dimension_numbers = #tpu.dot_dimension_numbers<[1], [0], [0], [1], [0, 0, 1, 1], [], []>} : vector<8x50xbf16>, vector<50x25xbf16>, vector<8x25xf32> -> vector<8x25xf32>
    %c0_15 = arith.constant 0 : index
    %c0_16 = arith.constant 0 : index
    %20 = vector.load %arg6[%c0_15, %c0_16] : memref<1x25xf32, #tpu.memory_space<vmem>>, vector<1x25xf32>
    %21 = vector.broadcast %20 : vector<1x25xf32> to vector<8x25xf32>
    %22 = arith.addf %19, %21 : vector<8x25xf32>
    %cst_17 = arith.constant 0.000000e+00 : f32
    %23 = vector.broadcast %cst_17 : f32 to vector<8x25xf32>
    %24 = arith.maximumf %22, %23 : vector<8x25xf32>
    %c0_18 = arith.constant 0 : index
    %c0_19 = arith.constant 0 : index
    %25 = vector.load %arg7[%c0_18, %c0_19] : memref<1x25xf32, #tpu.memory_space<vmem>>, vector<1x25xf32>
    %26 = vector.broadcast %25 : vector<1x25xf32> to vector<8x25xf32>
    %27 = arith.mulf %24, %26 : vector<8x25xf32>
    %cst_20 = arith.constant dense<0.000000e+00> : vector<8xf32>
    %28 = vector.multi_reduction <add>, %27, %cst_20 [1] : vector<8x25xf32> to vector<8xf32>
    %29 = vector.shape_cast %28 : vector<8xf32> to vector<8x1xf32>
    %c0_21 = arith.constant 0 : index
    %c0_22 = arith.constant 0 : index
    %30 = vector.load %arg8[%c0_21, %c0_22] : memref<1x1xf32, #tpu.memory_space<vmem>>, vector<1x1xf32>
    %31 = vector.broadcast %30 : vector<1x1xf32> to vector<8x1xf32>
    %32 = arith.addf %29, %31 : vector<8x1xf32>
    %c0_23 = arith.constant 0 : index
    %c0_24 = arith.constant 0 : index
    %33 = vector.load %arg9[%c0_23, %c0_24] : memref<8x1xf32, #tpu.memory_space<vmem>>, vector<8x1xf32>
    tpu.vector_store %arg9[%c0_23, %c0_24], %32 {strides = array<i32>} : memref<8x1xf32, #tpu.memory_space<vmem>>, vector<8x1xf32>,
    return
  }
}

</mosaic_0001>

<bundles_post_ra>
// kernel: tpu_custom_call.1
= control target key start
LH: loop header
LB: loop body
LE: loop exit
PB: predicated region body
PF: predicated region fallthrough
CT: control target
= control target key end

     0   :  { %vm163_vm0 = vcmask 1044480   ;;  %vm164_vm1 = vcmask 1045504   ;;  %vm97_vm2 = vcmask 1041408   ;;  %v338_v3 = vmov 65535   ;;  %s461_s1 = inlined_call_operand.vmem [shape: bf16[100,75], index: 1, kind: input, shape index: {}]   ;;  %s462_s3 = inlined_call_operand.vmem [shape: bf16[75,50], index: 3, kind: input, shape index: {}]   ;;  %s463_s2 = inlined_call_operand.vmem [shape: f32[1,75], index: 2, kind: input, shape index: {}]   ;;  %s464_s0 = inlined_call_operand.vmem [shape: f32[8,100], index: 0, kind: input, shape index: {}]   ;;  %s465_s4 = inlined_call_operand.vmem [shape: f32[1,50], index: 4, kind: input, shape index: {}]   ;;  %s466_s5 = inlined_call_operand.vmem [shape: bf16[50,25], index: 5, kind: input, shape index: {}]   ;;  %s467_s6 = inlined_call_operand.vmem [shape: f32[1,25], index: 6, kind: input, shape index: {}]   ;;  %s468_s7 = inlined_call_operand.vmem [shape: f32[1,25], index: 7, kind: input, shape index: {}]   ;;  %s469_s8 = inlined_call_operand.<no memory space> [shape: f32[1,1], index: 8, kind: input, shape index: {}]   ;;  %s470_s9 = inlined_call_operand.vmem [shape: f32[8,1], index: 9, kind: output, shape index: {}]  }
   0x1   :  { %v49_v0 = vld [vmem:[%s461_s1 + $0x30] sm:$0x3]  ;;  %v302_v2 = vld [vmem:[%s462_s3 + $0x20] sm:$0xf]  ;;  %v165_v4 = vsel %vm163_vm0, 4294967295, %v338_v3  ;;  %v323_v10 = vld [vmem:[%s461_s1 + $0x28] sm:$0xff]  ;;  %v14_v42 = vstv %s469_s8 }
   0x2   :  { %v79_v1 = vunpack.c.l.b16 %v49_v0  ;;  %v328_v6 = vld [vmem:[%s462_s3 + $0x20] sm:$0x30]  ;;  %v166_v7 = vsel %vm164_vm1, %v165_v4, 0  ;;  %v327_v12 = vld [vmem:[%s462_s3 + $0x18] sm:$0xff]  ;;  %v326_v14 = vld [vmem:[%s462_s3 + $0x10] sm:$0xff]  ;;  %vm93_vm3 = vcmask 818176  }
   0x3   :  { %v303_v8 = vor.u32 %v328_v6, %v302_v2  ;;  %v322_v13 = vld [vmem:[%s461_s1 + $0x20] sm:$0xff]  ;;  %v321_v15 = vld [vmem:[%s461_s1 + $0x18] sm:$0xff]  ;;  %v320_v16 = vld [vmem:[%s461_s1 + $0x10] sm:$0xff]  ;;  %vm221_vm4 = vcmask 1040384   ;;  %vm159_vm5 = vcmask 613376   ;;  %vm217_vm6 = vcmask 408576  }
   0x4   :  { %v86_v5 = vpack.c.b16 %v79_v1, %v79_v1  ;;  %v319_v17 = vld [vmem:[%s461_s1 + $0x8] sm:$0xff]  ;;  %v318_v18 = vld [vmem:[%s461_s1] sm:$0xff]  ;;  %v191_v23 = vld [vmem:[%s466_s5 + $0x18] sm:$0x1]  ;;  %15 = vst [vmem:[#allocation2] sm:$0x1] %v14_v42 }
   0x5   :  { %v168_v11 = vand.u32 %v303_v8, %v166_v7  ;;  %v35_v19 = vld [vmem:[%s464_s0] sm:$0xff]  ;;  %v325_v21 = vld [vmem:[%s462_s3 + $0x8] sm:$0xff]  ;;  %v209_v24 = vunpack.c.l.b16 %v191_v23  ;;  %v331_v27 = vld [vmem:[%s466_s5 + $0x10] sm:$0xff]  ;;  %vm244_vm7 = vcmask 203776   ;;  %vm253_vm8 = vcmask 7168  }
   0x6   :  { %v99_v9 = vsel %vm97_vm2, %v86_v5, 0  ;;  %v36_v20 = vpack.c.bf16 %v35_v19, %v35_v19  ;;  %v324_v22 = vld [vmem:[%s462_s3] sm:$0xff]  ;;  %v330_v34 = vld [vmem:[%s466_s5 + $0x8] sm:$0xff] }
   0x7   :  { %102 = vmatpush.bf16.msra.mxu0 %v99_v9  ;;  %173 = vmatpush.bf16.msra.mxu1 %v168_v11  ;;  %v213_v25 = vpack.c.b16 %v209_v24, %v209_v24  ;;  %v333_v28 = vld [vmem:[%s463_s2] ss:$0 sm:$0xff] }
   0x8   :  { %v329_v35 = vld [vmem:[%s466_s5] sm:$0xff] }
   0x9   :  { %v223_v26 = vsel %vm221_vm4, %v213_v25, 0  ;;  %v334_v36 = vld [vmem:[%s465_s4] ss:$0 sm:$0xff] }
   0xa   :  { %229 = vmatpush.bf16.msra.mxu2 %v223_v26  ;;  %v335_v43 = vld [vmem:[%s467_s6] ss:$0 sm:$0xff] }
   0xb   :  { %103 = vmatpush.bf16.msra.mxu0 %v323_v10  ;;  %174 = vmatpush.bf16.msra.mxu1 %v327_v12  ;;  %v336_v46 = vld [vmem:[%s468_s7] ss:$0 sm:$0xff] }
   0xc   :  { %v337_v51 = vld [vmem:[#allocation2] ss:$0 sm:$0xff] }
   0xe   :  { %230 = vmatpush.bf16.msra.mxu2 %v331_v27 }
   0xf   :  { %104 = vmatpush.bf16.msra.mxu0 %v322_v13  ;;  %175 = vmatpush.bf16.msra.mxu1 %v326_v14 }
  0x12   :  { %231 = vmatpush.bf16.msra.mxu2 %v330_v34 }
  0x13   :  { %105 = vmatpush.bf16.msra.mxu0 %v321_v15  ;;  %176 = vmatpush.bf16.msra.mxu1 %v325_v21 }
  0x16   :  { %232 = vmatpush.bf16.msra.mxu2 %v329_v35 }
  0x17   :  { %106 = vmatpush.bf16.msra.mxu0 %v320_v16  ;;  %177 = vmatpush.bf16.msra.mxu1 %v324_v22 }
  0x1b   :  { %107 = vmatpush.bf16.msra.mxu0 %v319_v17 }
  0x1f   :  { %108 = vmatpush.bf16.msra.mxu0 %v318_v18 }
  0x22   :  { %283 = vmatmul.msk.bf16.vlgmr.msra.gmra.mxu0 %vm93_vm3, %v36_v20 }
  0x9f   :  { %v110_v29 = vpop.f32.mrf.mxu0 }
  0xa0   :  { %v111_v30 = vadd.f32 %v333_v28, %v110_v29 }
  0xa2   :  { %v114_v31 = vmax.f32 %v111_v30, 0.0 }
  0xa4   :  { %v115_v32 = vpack.c.bf16 %v114_v31, %v114_v31 }
  0xa6   :  { %304 = vmatmul.msk.bf16.vlgmr.msra.gmra.mxu1 %vm159_vm5, %v115_v32 }
  0xa7   :  { %v112_v33 = vpop.f32.mrf.mxu0 }
 0x123   :  { %v179_v37 = vpop.f32.mrf.mxu1 }
 0x124   :  { %v180_v38 = vadd.f32 %v334_v36, %v179_v37 }
 0x126   :  { %v183_v39 = vmax.f32 %v180_v38, 0.0 }
 0x128   :  { %v184_v40 = vpack.c.bf16 %v183_v39, %v183_v39 }
 0x12a   :  { %317 = vmatmul.msk.bf16.vlgmr.msra.gmra.mxu2 %vm217_vm6, %v184_v40 }
 0x12b   :  { %v181_v41 = vpop.f32.mrf.mxu1 }
 0x1ad   :  { %v234_v44 = vpop.f32.mrf.mxu2 }
 0x1ae   :  { %v235_v45 = vadd.f32 %v335_v43, %v234_v44 }
 0x1b0   :  { %v238_v47 = vmax.f32 %v235_v45, 0.0 }
 0x1b2   :  { %v243_v48 = vmul.f32 %v336_v46, %v238_v47 }
 0x1b4   :  { %v245_v49 = vsel %vm244_vm7, %v243_v48, 0.0 }
 0x1b5   :  { %v236_v50 = vpop.f32.mrf.mxu2  ;;  %246 = vadd.xlane.f32.xlu0 %v245_v49 }
 0x228   :  { %v247_v52 = vpop.xlane.xlu0 %246 }
 0x229   :  { %v252_v53 = vadd.f32 %v337_v51, %v247_v52 }
 0x22b   :  { %254 = vst.msk [vmem:[%s470_s9] sm:$0xff] %vm253_vm8, %v252_v53 }

</bundles_post_ra>
